<compile_context>
chip_gen: v7x
topology: tpu7x:2x2x1
jax: 0.10.0
libtpu: 0.0.40
codegen_flags: <defaults>
</compile_context>

<pallas_src>
from functools import partial

import jax
import jax.numpy as jnp
from jax.experimental import pallas as pl
from jax.experimental.pallas import tpu as pltpu


def _round_up(x, m):
    return (x + m - 1) // m * m


def _reflect(i, n):
    """PyTorch ReflectionPad index map (single reflection; valid for |pad| < n)."""
    i = jnp.where(i < 0, -i, i)
    return jnp.where(i >= n, 2 * (n - 1) - i, i)


def _upsample_conv_kernel(x_ref, w_ref, b_ref, o_ref, *, K):
    """One batch block per grid step.

    x_ref: (1, K, M, WCp)   gathered source rows, channels folded into lanes; the lhs rows for
                            kernel row kh are x_ref[0, kh] (M = NB*Hout, batch-major)
    w_ref: (K, WCp, NWOp)   banded weight matrices (upsample + reflection pad + kw taps folded in)
    b_ref: (1, NWOp)        bias tiled across the folded output lane axis (f32)
    o_ref: (1, M, NWOp)     lane-dense output
    """
    m = o_ref.shape[1]
    nwo = o_ref.shape[2]
    acc = jnp.zeros((m, nwo), jnp.float32)
    # kh-outer, weight-stationary: each banded rhs w_ref[kh] is pushed to the MXU once and
    # contracted against the full (NB*Hout)-row lhs block in a single matmul. K is a static
    # Python int -> fully unrolled; accumulation stays f32.
    for kh in range(K):
        acc = acc + jnp.dot(x_ref[0, kh], w_ref[kh],
                            preferred_element_type=jnp.float32)
    o_ref[0] = (acc + b_ref[...]).astype(o_ref.dtype)


def precompute_upsample_conv_params(weight, bias, *, H, W, stride=1, upsample=None,
                                    compute_dtype=jnp.bfloat16):
    """Weight-/shape-only transforms. In a real model call this ONCE per layer."""
    Cout, Cin, K, _ = weight.shape
    p = K // 2
    u = int(upsample) if upsample else 1
    Hu, Wu = H * u, W * u
    assert p < Hu and p < Wu, "reflection pad wider than (upsampled) image"
    Hout = (Hu + 2 * p - K) // stride + 1
    Wout = (Wu + 2 * p - K) // stride + 1

    WC = W * Cin
    NWO = Wout * Cout
    WCp = _round_up(WC, 128)     # lane-dense contraction dim
    NWOp = _round_up(NWO, 128)   # lane-dense output dim (unmasked stores)

    # Row gather: padded row (ho*stride + kh) -> source row of the ORIGINAL image
    # (reflection pad and nearest-upsample row duplication folded into the index).
    kh_i = jnp.arange(K)
    ho_i = jnp.arange(Hout)
    hp = kh_i[:, None] + stride * ho_i[None, :]                # (K, Hout) padded coords
    src_rows = (_reflect(hp - p, Hu) // u).reshape(K * Hout)   # values in [0, H)

    # Banded weights:
    #   Bw[kh, s*Cin+ci, wo*Cout+co] = sum_{kw : src_col(wo*stride + kw) == s} weight[co,ci,kh,kw]
    # with src_col folding reflection pad + nearest-upsample column duplication.
    wo_i = jnp.arange(Wout)
    kw_i = jnp.arange(K)
    wp = wo_i[:, None] * stride + kw_i[None, :]                # (Wout, K) padded coords
    src_cols = _reflect(wp - p, Wu) // u                       # (Wout, K) in [0, W)
    onehot = (src_cols[:, :, None] == jnp.arange(W)[None, None, :]).astype(jnp.float32)
    band = jnp.einsum('wks,oihk->hsiwo', onehot, weight.astype(jnp.float32))
    band = band.reshape(K, WC, NWO)
    band = jnp.pad(band, ((0, 0), (0, WCp - WC), (0, NWOp - NWO))).astype(compute_dtype)

    b_lane = jnp.tile(bias.astype(jnp.float32), Wout)
    b_lane = jnp.pad(b_lane, (0, NWOp - NWO)).reshape(1, NWOp)

    meta = dict(K=K, Cin=Cin, Cout=Cout, Hout=Hout, Wout=Wout,
                WC=WC, WCp=WCp, NWO=NWO, NWOp=NWOp)
    return band, b_lane, src_rows, meta


def upsample_conv_apply(x, band, b_lane, src_rows, meta, *, batch_block=None,
                        compute_dtype=jnp.bfloat16):
    out_dtype = x.dtype
    N, Cin, H, W = x.shape
    K, Cout = meta["K"], meta["Cout"]
    Hout, Wout = meta["Hout"], meta["Wout"]
    WC, WCp = meta["WC"], meta["WCp"]
    NWO, NWOp = meta["NWO"], meta["NWOp"]

    # Batch block: raise the MXU M dim toward ~256 rows and amortize per-grid-step overhead.
    if batch_block is None:
        target = max(1, 256 // max(Hout, 1))
        NB = 1
        for d in range(1, N + 1):
            if N % d == 0 and d <= target:
                NB = d
    else:
        NB = batch_block
        assert N % NB == 0
    nb = N // NB
    M = NB * Hout

    # Layout fold: NCHW -> rows of (W*Cin) lanes (padded to a lane multiple), then ONE row gather.
    # This is the only per-call HBM-touching glue; no upsample / pad intermediates.
    x_rows = jnp.transpose(x, (0, 2, 3, 1)).reshape(N, H, WC).astype(compute_dtype)
    if WCp != WC:
        x_rows = jnp.pad(x_rows, ((0, 0), (0, 0), (0, WCp - WC)))
    x_g = x_rows[:, src_rows, :]                                  # (N, K*Hout, WCp), kh-major rows
    x_in = jnp.transpose(x_g.reshape(nb, NB, K, Hout, WCp),
                         (0, 2, 1, 3, 4)).reshape(nb, K, M, WCp)  # (nb, K, NB*Hout, WCp)

    out_folded = pl.pallas_call(
        partial(_upsample_conv_kernel, K=K),
        out_shape=jax.ShapeDtypeStruct((nb, M, NWOp), out_dtype),
        grid_spec=pltpu.PrefetchScalarGridSpec(
            num_scalar_prefetch=0,
            grid=(nb,),
            in_specs=[
                pl.BlockSpec((1, K, M, WCp), lambda g: (g, 0, 0, 0)),
                pl.BlockSpec((K, WCp, NWOp), lambda g: (0, 0, 0)),
                pl.BlockSpec((1, NWOp), lambda g: (0, 0)),
            ],
            out_specs=pl.BlockSpec((1, M, NWOp), lambda g: (g, 0, 0)),
        ),
        compiler_params=pltpu.CompilerParams(dimension_semantics=("parallel",)),
    )(x_in, band, b_lane)

    # (nb, NB*Hout, NWOp) -> drop lane pad -> (N, Cout, Hout, Wout)
    out = out_folded.reshape(nb, NB, Hout, NWOp)[..., :NWO]
    out = out.reshape(N, Hout, Wout, Cout)
    return jnp.transpose(out, (0, 3, 1, 2))


def upsample_conv_layer_forward(x, weight, bias, *, stride=1, upsample=None,
                                compute_dtype=jnp.bfloat16, batch_block=None):
    """UpsampleConvLayer.forward (norm=None path). x: (N, Cin, H, W) NCHW (PyTorch convention)."""
    _, _, H, W = x.shape
    band, b_lane, src_rows, meta = precompute_upsample_conv_params(
        weight, bias, H=H, W=W, stride=stride, upsample=upsample,
        compute_dtype=compute_dtype)
    return upsample_conv_apply(x, band, b_lane, src_rows, meta,
                               batch_block=batch_block, compute_dtype=compute_dtype)


if __name__ == "__main__":
    key = jax.random.PRNGKey(0)

    def make_params(k, Cin, Cout, K):
        kw_, kb_ = jax.random.split(k)
        fan_in = Cin * K * K
        bound = 1.0 / (fan_in ** 0.5)
        w = jax.random.uniform(kw_, (Cout, Cin, K, K), jnp.float32, -bound, bound)
        b = jax.random.uniform(kb_, (Cout,), jnp.float32, -bound, bound)
        return w, b

    def reference(x, weight, bias, stride, upsample):
        if upsample:
            u = int(upsample)
            x = jnp.repeat(jnp.repeat(x, u, axis=2), u, axis=3)
        p = weight.shape[-1] // 2
        xp = jnp.pad(x, ((0, 0), (0, 0), (p, p), (p, p)), mode="reflect")
        out = jax.lax.conv_general_dilated(
            xp.astype(jnp.bfloat16), weight.astype(jnp.bfloat16),
            window_strides=(stride, stride), padding="VALID",
            dimension_numbers=("NCHW", "OIHW", "NCHW"),
            preferred_element_type=jnp.float32,
        )
        return out + bias[None, :, None, None]

    # Config A: UpsampleConvLayer(4, 8, kernel_size=3, stride=1, upsample=2, norm=None)
    N, Cin, H, W, Cout, K = 2, 4, 16, 16, 8, 3
    kx, kp, key = jax.random.split(key, 3)
    x = jax.random.normal(kx, (N, Cin, H, W), jnp.float32)
    weight, bias = make_params(kp, Cin, Cout, K)
    out = jax.block_until_ready(
        upsample_conv_layer_forward(x, weight, bias, stride=1, upsample=2))
    ref = reference(x, weight, bias, stride=1, upsample=2)
    assert out.shape == (N, Cout, 2 * H, 2 * W), out.shape
    assert jnp.allclose(out, ref, atol=3e-2, rtol=3e-2), float(jnp.max(jnp.abs(out - ref)))

    # Config B: no upsample, stride=2 (exercises the row gather + NWO lane padding: 64 -> 128)
    kx, kp, key = jax.random.split(key, 3)
    x2 = jax.random.normal(kx, (N, Cin, H, W), jnp.float32)
    w2, b2 = make_params(kp, Cin, Cout, K)
    out2 = jax.block_until_ready(
        upsample_conv_layer_forward(x2, w2, b2, stride=2, upsample=None))
    ref2 = reference(x2, w2, b2, stride=2, upsample=None)
    assert out2.shape == (N, Cout, H // 2, W // 2), out2.shape
    assert jnp.allclose(out2, ref2, atol=3e-2, rtol=3e-2), float(jnp.max(jnp.abs(out2 - ref2)))

    print("KERNEL_OK")
</pallas_src>

<mosaic_0001>
module attributes {stable_mosaic.version = 11 : i64} {
  func.func @_upsample_conv_kernel(%arg0: i32, %arg1: memref<1x3x64x128xbf16, #tpu.memory_space<vmem>>, %arg2: memref<3x128x256xbf16, #tpu.memory_space<vmem>>, %arg3: memref<1x256xf32, #tpu.memory_space<vmem>>, %arg4: memref<1x64x256xf32, #tpu.memory_space<vmem>>) attributes {dimension_semantics = [#tpu.dimension_semantics<parallel>], iteration_bounds = array<i64: 1>, scalar_prefetch = 0 : i64, scratch_operands = 0 : i64, tpu.core_type = #tpu.core_type<tc>, window_params = [{transform_indices = @transform_0, window_bounds = array<i64: 1, 3, 64, 128>}, {pipeline_mode = #tpu.pipeline_mode<synchronous>, transform_indices = @transform_1, window_bounds = array<i64: 3, 128, 256>}, {pipeline_mode = #tpu.pipeline_mode<synchronous>, transform_indices = @transform_2, window_bounds = array<i64: 1, 256>}, {transform_indices = @transform_3, window_bounds = array<i64: 1, 64, 256>}]} {
    %cst = arith.constant 0.000000e+00 : f32
    %0 = vector.broadcast %cst : f32 to vector<64x256xf32>
    %c0 = arith.constant 0 : index
    %c0_0 = arith.constant 0 : index
    %c0_1 = arith.constant 0 : index
    %c0_2 = arith.constant 0 : index
    %1 = vector.load %arg1[%c0, %c0_0, %c0_1, %c0_2] : memref<1x3x64x128xbf16, #tpu.memory_space<vmem>>, vector<1x1x64x128xbf16>
    %2 = vector.shape_cast %1 : vector<1x1x64x128xbf16> to vector<64x128xbf16>
    %c0_3 = arith.constant 0 : index
    %c0_4 = arith.constant 0 : index
    %c0_5 = arith.constant 0 : index
    %3 = vector.load %arg2[%c0_3, %c0_4, %c0_5] : memref<3x128x256xbf16, #tpu.memory_space<vmem>>, vector<1x128x256xbf16>
    %4 = vector.shape_cast %3 : vector<1x128x256xbf16> to vector<128x256xbf16>
    %cst_6 = arith.constant dense<0.000000e+00> : vector<64x256xf32>
    %5 = tpu.matmul %2, %4, %cst_6 {dimension_numbers = #tpu.dot_dimension_numbers<[1], [0], [0], [1], [0, 0, 1, 1], [], []>} : vector<64x128xbf16>, vector<128x256xbf16>, vector<64x256xf32> -> vector<64x256xf32>
    %6 = arith.addf %0, %5 : vector<64x256xf32>
    %c0_7 = arith.constant 0 : index
    %c1 = arith.constant 1 : index
    %c0_8 = arith.constant 0 : index
    %c0_9 = arith.constant 0 : index
    %7 = vector.load %arg1[%c0_7, %c1, %c0_8, %c0_9] : memref<1x3x64x128xbf16, #tpu.memory_space<vmem>>, vector<1x1x64x128xbf16>
    %8 = vector.shape_cast %7 : vector<1x1x64x128xbf16> to vector<64x128xbf16>
    %c1_10 = arith.constant 1 : index
    %c0_11 = arith.constant 0 : index
    %c0_12 = arith.constant 0 : index
    %9 = vector.load %arg2[%c1_10, %c0_11, %c0_12] : memref<3x128x256xbf16, #tpu.memory_space<vmem>>, vector<1x128x256xbf16>
    %10 = vector.shape_cast %9 : vector<1x128x256xbf16> to vector<128x256xbf16>
    %cst_13 = arith.constant dense<0.000000e+00> : vector<64x256xf32>
    %11 = tpu.matmul %8, %10, %cst_13 {dimension_numbers = #tpu.dot_dimension_numbers<[1], [0], [0], [1], [0, 0, 1, 1], [], []>} : vector<64x128xbf16>, vector<128x256xbf16>, vector<64x256xf32> -> vector<64x256xf32>
    %12 = arith.addf %6, %11 : vector<64x256xf32>
    %c0_14 = arith.constant 0 : index
    %c2 = arith.constant 2 : index
    %c0_15 = arith.constant 0 : index
    %c0_16 = arith.constant 0 : index
    %13 = vector.load %arg1[%c0_14, %c2, %c0_15, %c0_16] : memref<1x3x64x128xbf16, #tpu.memory_space<vmem>>, vector<1x1x64x128xbf16>
    %14 = vector.shape_cast %13 : vector<1x1x64x128xbf16> to vector<64x128xbf16>
    %c2_17 = arith.constant 2 : index
    %c0_18 = arith.constant 0 : index
    %c0_19 = arith.constant 0 : index
    %15 = vector.load %arg2[%c2_17, %c0_18, %c0_19] : memref<3x128x256xbf16, #tpu.memory_space<vmem>>, vector<1x128x256xbf16>
    %16 = vector.shape_cast %15 : vector<1x128x256xbf16> to vector<128x256xbf16>
    %cst_20 = arith.constant dense<0.000000e+00> : vector<64x256xf32>
    %17 = tpu.matmul %14, %16, %cst_20 {dimension_numbers = #tpu.dot_dimension_numbers<[1], [0], [0], [1], [0, 0, 1, 1], [], []>} : vector<64x128xbf16>, vector<128x256xbf16>, vector<64x256xf32> -> vector<64x256xf32>
    %18 = arith.addf %12, %17 : vector<64x256xf32>
    %c0_21 = arith.constant 0 : index
    %c0_22 = arith.constant 0 : index
    %19 = vector.load %arg3[%c0_21, %c0_22] : memref<1x256xf32, #tpu.memory_space<vmem>>, vector<1x256xf32>
    %20 = vector.broadcast %19 : vector<1x256xf32> to vector<64x256xf32>
    %21 = arith.addf %18, %20 : vector<64x256xf32>
    %c0_23 = arith.constant 0 : index
    %c0_24 = arith.constant 0 : index
    %c0_25 = arith.constant 0 : index
    %22 = vector.load %arg4[%c0_23, %c0_24, %c0_25] : memref<1x64x256xf32, #tpu.memory_space<vmem>>, vector<1x64x256xf32>
    %23 = vector.shape_cast %22 : vector<1x64x256xf32> to vector<64x256xf32>
    %24 = vector.shape_cast %21 : vector<64x256xf32> to vector<1x64x256xf32>
    tpu.vector_store %arg4[%c0_23, %c0_24, %c0_25], %24 {strides = array<i32>} : memref<1x64x256xf32, #tpu.memory_space<vmem>>, vector<1x64x256xf32>,
    return
  }
  func.func @transform_0(%arg0: i32) -> (i32, i32, i32, i32) {
    %c0_i32 = arith.constant 0 : i32
    %c0_i32_0 = arith.constant 0 : i32
    %c0_i32_1 = arith.constant 0 : i32
    %c0_i32_2 = arith.constant 0 : i32
    return %arg0, %c0_i32, %c0_i32_0, %c0_i32_1 : i32, i32, i32, i32
  }
  func.func @transform_1(%arg0: i32) -> (i32, i32, i32) {
    %c0_i32 = arith.constant 0 : i32
    %c0_i32_0 = arith.constant 0 : i32
    %c0_i32_1 = arith.constant 0 : i32
    %c0_i32_2 = arith.constant 0 : i32
    return %c0_i32, %c0_i32_0, %c0_i32_1 : i32, i32, i32
  }
  func.func @transform_2(%arg0: i32) -> (i32, i32) {
    %c0_i32 = arith.constant 0 : i32
    %c0_i32_0 = arith.constant 0 : i32
    %c0_i32_1 = arith.constant 0 : i32
    return %c0_i32, %c0_i32_0 : i32, i32
  }
  func.func @transform_3(%arg0: i32) -> (i32, i32, i32) {
    %c0_i32 = arith.constant 0 : i32
    %c0_i32_0 = arith.constant 0 : i32
    %c0_i32_1 = arith.constant 0 : i32
    return %arg0, %c0_i32, %c0_i32_0 : i32, i32, i32
  }
}

</mosaic_0001>

<bundles_post_ra>
// kernel: tpu_custom_call.1
= control target key start
LH: loop header
LB: loop body
LE: loop exit
PB: predicated region body
PF: predicated region fallthrough
CT: control target
= control target key end

     0   :  { %8 = vsyncpa [#allocation3], 0  ;;  %s1096_s0 = inlined_call_operand.hbm [shape: bf16[1,3,64,128], index: 0, kind: input, shape index: {}]   ;;  %s1097_s1 = inlined_call_operand.hbm [shape: bf16[3,128,256], index: 1, kind: input, shape index: {}]   ;;  %s1098_s2 = inlined_call_operand.vmem [shape: f32[1,256], index: 2, kind: input, shape index: {}]   ;;  %s1099_s3 = inlined_call_operand.hbm [shape: f32[1,64,256], index: 3, kind: output, shape index: {}]  }
   0x1   :  { %9 = vsyncpa [#allocation6], 0 }
   0x2   :  { %10 = vsyncpa [#allocation4], 0  ;;  %s1003_s12 = smov [#allocation2]   ;;  %s931_s16 = scalar_lea.hbm %s1096_s0, 1536 }
   0x3   :  { %s16_s13 = sshll.u32 %s1003_s12, 4  ;;  %p932_p0 = scmp.ne.s32.totalorder %s1096_s0, %s931_s16  ;;  %s17_s13 = int_to_ptr.vmem [resolvable:$true] %s16_s13 }
   0x4   :  { %p935_p1 = scmp.lt.u32.totalorder %s931_s16, %s1096_s0 }
   0x6   :  { %p937_p2 = pnand %p935_p1, %p932_p0 }
   0x8   :  { %940 = shalt.err (!%p937_p2)
}
   0x9   :  { %s941_s21 = scalar_lea.vmem %s17_s13, 1536  ;;  %p946_p4 = scmp.lt.s32.totalorder %s17_s13, %s17_s13 }
   0xa   :  { %p942_p3 = scmp.ne.s32.totalorder %s17_s13, %s941_s21  ;;  %p947_p5 = scmp.lt.s32.totalorder %s941_s21, %s941_s21 }
   0xc   :  { %p948_p6 = por %p947_p5, %p946_p4 }
   0xe   :  { %p949_p7 = pnand %p948_p6, %p942_p3 }
  0x10   :  { %952 = shalt.err (!%p949_p7)
}
  0x11   :  { %s1004_s22 = smov 64   ;;  %s1005_s23 = smov 4  }
  0x12   :  { %22 = dma.hbm_to_vmem [thread:$0]  %s1096_s0, 1536, %s17_s13, [#allocation3], %s1004_s22, %s1004_s22, %s1005_s23  }
  0x13   :  { %s1006_s26 = smov [#allocation5]   ;;  %s953_s30 = scalar_lea.hbm %s1097_s1, 6144 }
  0x14   :  { %s28_s27 = sshll.u32 %s1006_s26, 4  ;;  %p954_p8 = scmp.ne.s32.totalorder %s1097_s1, %s953_s30  ;;  %s29_s27 = int_to_ptr.vmem [resolvable:$true] %s28_s27 }
  0x15   :  { %p957_p9 = scmp.lt.u32.totalorder %s953_s30, %s1097_s1 }
  0x17   :  { %p959_p10 = pnand %p957_p9, %p954_p8 }
  0x19   :  { %962 = shalt.err (!%p959_p10)
}
  0x1a   :  { %s963_s8 = scalar_lea.vmem %s29_s27, 6144  ;;  %p968_p12 = scmp.lt.s32.totalorder %s29_s27, %s29_s27 }
  0x1b   :  { %p964_p11 = scmp.ne.s32.totalorder %s29_s27, %s963_s8  ;;  %p969_p13 = scmp.lt.s32.totalorder %s963_s8, %s963_s8 }
  0x1d   :  { %p970_p0 = por %p969_p13, %p968_p12 }
  0x1f   :  { %p971_p1 = pnand %p970_p0, %p964_p11 }
  0x21   :  { %974 = shalt.err (!%p971_p1)
}
  0x22   :  { %s1007_s0 = smov 128   ;;  %s1008_s9 = smov 8  }
  0x23   :  { %34 = dma.hbm_to_vmem [thread:$0]  %s1097_s1, 6144, %s29_s27, [#allocation6], %s1007_s0, %s1007_s0, %s1008_s9  }
  0x24   :  { %997 = dma.done.wait [#allocation3], 1536  }
  0x25   :  { %998 = vsyncadd [#allocation3], 4294965760 }
  0x26   :  { %999 = dma.done.wait [#allocation6], 6144  }
  0x27   :  { %1000 = vsyncadd [#allocation6], 4294961152  ;;  %v1009_v0 = vmov 0   ;;  %v847_v1 = vld [vmem:[#allocation5 + $0x84] ss:$8 sps:$4 sm:$0xff]   ;;  %v911_v46 = vld [vmem:[#allocation2 + $0x30] sm:$0xff]  }
  0x28   :  { %230 = vmatprep.mubr.bf16.mxu1 %v1009_v0  ;;  %407 = vmatprep.mubr.bf16.mxu0 %v1009_v0  ;;  %v849_v2 = vld [vmem:[#allocation5 + $0x4] ss:$8 sps:$4 sm:$0xff]   ;;  %v851_v3 = vld [vmem:[#allocation5 + $0x80] ss:$8 sps:$4 sm:$0xff]   ;;  %v853_v5 = vld [vmem:[#allocation5 + $0x94] ss:$8 sps:$4 sm:$0xff]  }
  0x29   :  { %198 = vmatprep.subr.bf16.mxu1 %v847_v1  ;;  %v852_v4 = vld [vmem:[#allocation5] ss:$8 sps:$4 sm:$0xff]   ;;  %375 = vmatprep.subr.bf16.mxu0 %v849_v2  ;;  %v855_v6 = vld [vmem:[#allocation5 + $0x14] ss:$8 sps:$4 sm:$0xff]   ;;  %v857_v7 = vld [vmem:[#allocation5 + $0x90] ss:$8 sps:$4 sm:$0xff]  }
  0x2a   :  { %199 = vmatpush1.bf16.msra.mxu1 %v851_v3  ;;  %376 = vmatpush1.bf16.msra.mxu0 %v852_v4  ;;  %v858_v8 = vld [vmem:[#allocation5 + $0x10] ss:$8 sps:$4 sm:$0xff]   ;;  %v859_v9 = vld [vmem:[#allocation5 + $0xa4] ss:$8 sps:$4 sm:$0xff]   ;;  %v863_v11 = vld [vmem:[#allocation5 + $0xa0] ss:$8 sps:$4 sm:$0xff]  }
  0x2b   :  { %200 = vmatprep.subr.bf16.mxu1 %v853_v5  ;;  %377 = vmatprep.subr.bf16.mxu0 %v855_v6  ;;  %v861_v10 = vld [vmem:[#allocation5 + $0x24] ss:$8 sps:$4 sm:$0xff]   ;;  %v864_v12 = vld [vmem:[#allocation5 + $0x20] ss:$8 sps:$4 sm:$0xff]   ;;  %v865_v13 = vld [vmem:[#allocation5 + $0xb4] ss:$8 sps:$4 sm:$0xff]  }
  0x2c   :  { %v867_v14 = vld [vmem:[#allocation5 + $0x34] ss:$8 sps:$4 sm:$0xff]   ;;  %v869_v15 = vld [vmem:[#allocation5 + $0xb0] ss:$8 sps:$4 sm:$0xff]   ;;  %v871_v17 = vld [vmem:[#allocation5 + $0xc4] ss:$8 sps:$4 sm:$0xff]  }
  0x2d   :  { %v870_v16 = vld [vmem:[#allocation5 + $0x30] ss:$8 sps:$4 sm:$0xff]   ;;  %v873_v18 = vld [vmem:[#allocation5 + $0x44] ss:$8 sps:$4 sm:$0xff]   ;;  %v875_v19 = vld [vmem:[#allocation5 + $0xc0] ss:$8 sps:$4 sm:$0xff]  }
  0x2e   :  { %201 = vmatpush1.bf16.msra.mxu1 %v857_v7  ;;  %378 = vmatpush1.bf16.msra.mxu0 %v858_v8  ;;  %v876_v20 = vld [vmem:[#allocation5 + $0x40] ss:$8 sps:$4 sm:$0xff]   ;;  %v877_v21 = vld [vmem:[#allocation5 + $0xd4] ss:$8 sps:$4 sm:$0xff]   ;;  %v881_v23 = vld [vmem:[#allocation5 + $0xd0] ss:$8 sps:$4 sm:$0xff]  }
  0x2f   :  { %202 = vmatprep.subr.bf16.mxu1 %v859_v9  ;;  %379 = vmatprep.subr.bf16.mxu0 %v861_v10  ;;  %v879_v22 = vld [vmem:[#allocation5 + $0x54] ss:$8 sps:$4 sm:$0xff]   ;;  %v882_v24 = vld [vmem:[#allocation5 + $0x50] ss:$8 sps:$4 sm:$0xff]   ;;  %v883_v25 = vld [vmem:[#allocation5 + $0xe4] ss:$8 sps:$4 sm:$0xff]  }
  0x30   :  { %v885_v26 = vld [vmem:[#allocation5 + $0x64] ss:$8 sps:$4 sm:$0xff]   ;;  %v887_v27 = vld [vmem:[#allocation5 + $0xe0] ss:$8 sps:$4 sm:$0xff]   ;;  %v889_v29 = vld [vmem:[#allocation5 + $0xf4] ss:$8 sps:$4 sm:$0xff]  }
  0x31   :  { %v888_v28 = vld [vmem:[#allocation5 + $0x60] ss:$8 sps:$4 sm:$0xff]   ;;  %v891_v30 = vld [vmem:[#allocation5 + $0x74] ss:$8 sps:$4 sm:$0xff]   ;;  %v893_v31 = vld [vmem:[#allocation5 + $0xf0] ss:$8 sps:$4 sm:$0xff]  }
  0x32   :  { %203 = vmatpush1.bf16.msra.mxu1 %v863_v11  ;;  %380 = vmatpush1.bf16.msra.mxu0 %v864_v12  ;;  %v894_v32 = vld [vmem:[#allocation5 + $0x70] ss:$8 sps:$4 sm:$0xff]   ;;  %v899_v33 = vld [vmem:[#allocation5 + $0x104] ss:$8 sps:$4 sm:$0xff]   ;;  %v897_v36 = vld [vmem:[#allocation5 + $0x100] ss:$8 sps:$4 sm:$0xff]  }
  0x33   :  { %204 = vmatprep.subr.bf16.mxu1 %v865_v13  ;;  %381 = vmatprep.subr.bf16.mxu0 %v867_v14  ;;  %v895_v34 = vld [vmem:[#allocation2 + $0x20] sm:$0xff]   ;;  %v902_v37 = vld [vmem:[#allocation5 + $0x114] ss:$8 sps:$4 sm:$0xff]   ;;  %v900_v38 = vld [vmem:[#allocation5 + $0x110] ss:$8 sps:$4 sm:$0xff]  }
  0x34   :  { %v896_v35 = vld [vmem:[#allocation2] sm:$0xff]   ;;  %v903_v40 = vld [vmem:[#allocation2 + $0x28] sm:$0xff]   ;;  %v910_v43 = vld [vmem:[#allocation5 + $0x134] ss:$8 sps:$4 sm:$0xff]  }
  0x35   :  { %v907_v39 = vld [vmem:[#allocation5 + $0x124] ss:$8 sps:$4 sm:$0xff]   ;;  %v905_v42 = vld [vmem:[#allocation5 + $0x120] ss:$8 sps:$4 sm:$0xff]   ;;  %v908_v44 = vld [vmem:[#allocation5 + $0x130] ss:$8 sps:$4 sm:$0xff]  }
  0x36   :  { %205 = vmatpush1.bf16.msra.mxu1 %v869_v15  ;;  %382 = vmatpush1.bf16.msra.mxu0 %v870_v16  ;;  %v904_v41 = vld [vmem:[#allocation2 + $0x8] sm:$0xff]   ;;  %v912_v47 = vld [vmem:[#allocation2 + $0x10] sm:$0xff]   ;;  %v919_v52 = vld [vmem:[#allocation2 + $0x38] sm:$0xff]   ;;  %v669_v16 = vlaneseq }
  0x37   :  { %206 = vmatprep.subr.bf16.mxu1 %v871_v17  ;;  %383 = vmatprep.subr.bf16.mxu0 %v873_v18  ;;  %v915_v45 = vld [vmem:[#allocation5 + $0x144] ss:$8 sps:$4 sm:$0xff]   ;;  %v913_v48 = vld [vmem:[#allocation5 + $0x140] ss:$8 sps:$4 sm:$0xff]   ;;  %v918_v49 = vld [vmem:[#allocation5 + $0x154] ss:$8 sps:$4 sm:$0xff]  }
  0x38   :  { %v916_v50 = vld [vmem:[#allocation5 + $0x150] ss:$8 sps:$4 sm:$0xff]   ;;  %v923_v51 = vld [vmem:[#allocation5 + $0x164] ss:$8 sps:$4 sm:$0xff]   ;;  %v921_v54 = vld [vmem:[#allocation5 + $0x160] ss:$8 sps:$4 sm:$0xff]  }
  0x39   :  { %v920_v53 = vld [vmem:[#allocation2 + $0x18] sm:$0xff]   ;;  %v927_v57 = vld [vmem:[#allocation2 + $0x40] sm:$0xff]   ;;  %v928_v58 = vld [vmem:[#allocation2 + $0x50] sm:$0xff]   ;;  %v670_v18 = vshrl.u32 %v669_v16, 7 }
  0x3a   :  { %207 = vmatpush1.bf16.msra.mxu1 %v875_v19  ;;  %384 = vmatpush1.bf16.msra.mxu0 %v876_v20  ;;  %v926_v55 = vld [vmem:[#allocation5 + $0x174] ss:$8 sps:$4 sm:$0xff]   ;;  %v924_v56 = vld [vmem:[#allocation5 + $0x170] ss:$8 sps:$4 sm:$0xff]   ;;  %v929_v59 = vld [vmem:[#allocation2 + $0x48] sm:$0xff]  }
  0x3b   :  { %208 = vmatprep.subr.bf16.mxu1 %v877_v21  ;;  %385 = vmatprep.subr.bf16.mxu0 %v879_v22  ;;  %v930_v60 = vld [vmem:[#allocation2 + $0x58] sm:$0xff]  }
  0x3e   :  { %209 = vmatpush1.bf16.msra.mxu1 %v881_v23  ;;  %386 = vmatpush1.bf16.msra.mxu0 %v882_v24 }
  0x3f   :  { %210 = vmatprep.subr.bf16.mxu1 %v883_v25  ;;  %387 = vmatprep.subr.bf16.mxu0 %v885_v26 }
  0x42   :  { %211 = vmatpush1.bf16.msra.mxu1 %v887_v27  ;;  %388 = vmatpush1.bf16.msra.mxu0 %v888_v28 }
  0x43   :  { %212 = vmatprep.subr.bf16.mxu1 %v889_v29  ;;  %389 = vmatprep.subr.bf16.mxu0 %v891_v30  ;;  %v671_v30 = vsub.s32 0, %v670_v18 }
  0x46   :  { %213 = vmatpush1.bf16.msra.mxu1 %v893_v31  ;;  %390 = vmatpush1.bf16.msra.mxu0 %v894_v32  ;;  %v667_v32 = vld [vmem:[%s1098_s2] sm:$0x3]  ;;  %s1010_s2 = smov [#allocation7]  }
  0x47   :  { %578 = vmatprep.subr.bf16.mxu0 %v899_v33  ;;  %789 = vmatprep.subr.bf16.mxu1 %v899_v33  ;;  %v675_v33 = vsub.s32 1, %v670_v18  ;;  %s716_s13 = sshll.u32 %s1010_s2, 4  ;;  %s717_s13 = int_to_ptr.vmem [resolvable:$true] %s716_s13 }
  0x48   :  { %s975_s14 = scalar_lea.vmem %s717_s13, 2048  ;;  %p980_p3 = scmp.lt.s32.totalorder %s717_s13, %s717_s13 }
  0x49   :  { %231 = vmatmul.mubr.bf16.vlgmr.msra.gmra.mrb[0].mxu1 %v895_v34  ;;  %408 = vmatmul.mubr.bf16.vlgmr.msra.gmra.mrb[0].mxu0 %v896_v35  ;;  %v672_v34 = vrot.slane %v667_v32, %v671_v30  ;;  %p976_p2 = scmp.ne.s32.totalorder %s717_s13, %s975_s14  ;;  %p981_p4 = scmp.lt.s32.totalorder %s975_s14, %s975_s14 }
  0x4a   :  { %579 = vmatpush1.bf16.msra.mxu0 %v897_v36  ;;  %797 = vmatpush1.bf16.msra.mxu1 %v897_v36 }
  0x4b   :  { %580 = vmatprep.subr.bf16.mxu0 %v902_v37  ;;  %790 = vmatprep.subr.bf16.mxu1 %v902_v37  ;;  %v676_v37 = vrot.slane %v667_v32, %v675_v33  ;;  %p982_p5 = por %p981_p4, %p980_p3 }
  0x4c   :  { %240 = vmatprep.mubr.bf16.mxu1 %v1009_v0  ;;  %417 = vmatprep.mubr.bf16.mxu0 %v1009_v0 }
  0x4d   :  { %p983_p6 = pnand %p982_p5, %p976_p2 }
  0x4e   :  { %581 = vmatpush1.bf16.msra.mxu0 %v900_v38  ;;  %798 = vmatpush1.bf16.msra.mxu1 %v900_v38 }
  0x4f   :  { %582 = vmatprep.subr.bf16.mxu0 %v907_v39  ;;  %791 = vmatprep.subr.bf16.mxu1 %v907_v39 }
  0x51   :  { %241 = vmatmul.mubr.bf16.gmra.mrb[4].mxu1 %v903_v40  ;;  %418 = vmatmul.mubr.bf16.gmra.mrb[4].mxu0 %v904_v41 }
  0x52   :  { %583 = vmatpush1.bf16.msra.mxu0 %v905_v42  ;;  %799 = vmatpush1.bf16.msra.mxu1 %v905_v42 }
  0x53   :  { %584 = vmatprep.subr.bf16.mxu0 %v910_v43  ;;  %792 = vmatprep.subr.bf16.mxu1 %v910_v43 }
  0x54   :  { %250 = vmatprep.mubr.bf16.mxu1 %v1009_v0  ;;  %427 = vmatprep.mubr.bf16.mxu0 %v1009_v0 }
  0x56   :  { %585 = vmatpush1.bf16.msra.mxu0 %v908_v44  ;;  %800 = vmatpush1.bf16.msra.mxu1 %v908_v44 }
  0x57   :  { %586 = vmatprep.subr.bf16.mxu0 %v915_v45  ;;  %793 = vmatprep.subr.bf16.mxu1 %v915_v45 }
  0x59   :  { %251 = vmatmul.mubr.bf16.gmra.mrb[8].mxu1 %v911_v46  ;;  %428 = vmatmul.mubr.bf16.gmra.mrb[8].mxu0 %v912_v47 }
  0x5a   :  { %587 = vmatpush1.bf16.msra.mxu0 %v913_v48  ;;  %801 = vmatpush1.bf16.msra.mxu1 %v913_v48 }
  0x5b   :  { %588 = vmatprep.subr.bf16.mxu0 %v918_v49  ;;  %794 = vmatprep.subr.bf16.mxu1 %v918_v49 }
  0x5c   :  { %260 = vmatprep.mubr.bf16.mxu1 %v1009_v0  ;;  %437 = vmatprep.mubr.bf16.mxu0 %v1009_v0 }
  0x5e   :  { %589 = vmatpush1.bf16.msra.mxu0 %v916_v50  ;;  %802 = vmatpush1.bf16.msra.mxu1 %v916_v50 }
  0x5f   :  { %590 = vmatprep.subr.bf16.mxu0 %v923_v51  ;;  %795 = vmatprep.subr.bf16.mxu1 %v923_v51 }
  0x61   :  { %261 = vmatmul.mubr.bf16.gmra.mrb[12].mxu1 %v919_v52  ;;  %438 = vmatmul.mubr.bf16.gmra.mrb[12].mxu0 %v920_v53 }
  0x62   :  { %591 = vmatpush1.bf16.msra.mxu0 %v921_v54  ;;  %803 = vmatpush1.bf16.msra.mxu1 %v921_v54 }
  0x63   :  { %592 = vmatprep.subr.bf16.mxu0 %v926_v55  ;;  %796 = vmatprep.subr.bf16.mxu1 %v926_v55 }
  0x64   :  { %610 = vmatprep.mubr.bf16.mxu0 %v1009_v0  ;;  %630 = vmatprep.mubr.bf16.mxu1 %v1009_v0 }
  0x66   :  { %593 = vmatpush1.bf16.msra.mxu0 %v924_v56  ;;  %804 = vmatpush1.bf16.msra.mxu1 %v924_v56 }
  0x69   :  { %611 = vmatmul.mubr.bf16.vlgmr.msra.gmra.mrb[0].mxu0 %v927_v57  ;;  %631 = vmatmul.mubr.bf16.vlgmr.msra.gmra.mrb[16].mxu1 %v928_v58 }
  0x6a   :  { %620 = vmatprep.mubr.bf16.mxu0 %v1009_v0  ;;  %640 = vmatprep.mubr.bf16.mxu1 %v1009_v0 }
  0x71   :  { %621 = vmatmul.mubr.bf16.gmra.mrb[4].mxu0 %v929_v59  ;;  %641 = vmatmul.mubr.bf16.gmra.mrb[20].mxu1 %v930_v60 }
 0x11c   :  { %v232_v61 = vpop.f32.mrb[0].mxu1 }
 0x11d   :  { %v234_v62 = vpop.f32.mrb[1].mxu1 }
 0x11e   :  { %v236_v63 = vpop.f32.mrb[2].mxu1 }
 0x11f   :  { %v238_v1 = vpop.f32.mrb[3].mxu1 }
 0x124   :  { %v1069_v2 = vpop.f32.mrb[4].mxu1 }
 0x125   :  { %v1071_v3 = vpop.f32.mrb[5].mxu1 }
 0x126   :  { %v1073_v4 = vpop.f32.mrb[6].mxu1 }
 0x127   :  { %v1075_v5 = vpop.f32.mrb[7].mxu1 }
 0x12c   :  { %v252_v6 = vpop.f32.mrb[8].mxu1  ;;  %v429_v7 = vpop.f32.mrb[8].mxu0 }
 0x12d   :  { %v430_v8 = vadd.f32 %v429_v7, %v252_v6  ;;  %v254_v0 = vpop.f32.mrb[9].mxu1  ;;  %v431_v9 = vpop.f32.mrb[9].mxu0 }
 0x12e   :  { %v432_v10 = vadd.f32 %v431_v9, %v254_v0  ;;  %v256_v11 = vpop.f32.mrb[10].mxu1  ;;  %v433_v12 = vpop.f32.mrb[10].mxu0 }
 0x12f   :  { %v434_v13 = vadd.f32 %v433_v12, %v256_v11  ;;  %v258_v14 = vpop.f32.mrb[11].mxu1  ;;  %v435_v15 = vpop.f32.mrb[11].mxu0 }
 0x130   :  { %v436_v17 = vadd.f32 %v435_v15, %v258_v14 }
 0x134   :  { %v262_v19 = vpop.f32.mrb[12].mxu1  ;;  %v439_v20 = vpop.f32.mrb[12].mxu0 }
 0x135   :  { %v440_v21 = vadd.f32 %v439_v20, %v262_v19  ;;  %v264_v22 = vpop.f32.mrb[13].mxu1  ;;  %v441_v23 = vpop.f32.mrb[13].mxu0 }
 0x136   :  { %v442_v24 = vadd.f32 %v441_v23, %v264_v22  ;;  %v266_v25 = vpop.f32.mrb[14].mxu1  ;;  %v443_v26 = vpop.f32.mrb[14].mxu0 }
 0x137   :  { %v444_v27 = vadd.f32 %v443_v26, %v266_v25  ;;  %v268_v28 = vpop.f32.mrb[15].mxu1  ;;  %v445_v29 = vpop.f32.mrb[15].mxu0 }
 0x138   :  { %v446_v31 = vadd.f32 %v445_v29, %v268_v28 }
 0x13c   :  { %v612_v35 = vpop.f32.mrb[0].mxu0  ;;  %v632_v36 = vpop.f32.mrb[16].mxu1 }
 0x13d   :  { %v805_v38 = vadd.f32 %v612_v35, %v232_v61  ;;  %v659_v39 = vadd.f32 %v632_v36, %v430_v8  ;;  %v614_v40 = vpop.f32.mrb[1].mxu0  ;;  %v634_v41 = vpop.f32.mrb[17].mxu1 }
 0x13e   :  { %v806_v42 = vadd.f32 %v614_v40, %v234_v62  ;;  %v660_v43 = vadd.f32 %v634_v41, %v432_v10  ;;  %v616_v44 = vpop.f32.mrb[2].mxu0  ;;  %v636_v45 = vpop.f32.mrb[18].mxu1 }
 0x13f   :  { %v679_v46 = vadd.f32 %v805_v38, %v672_v34  ;;  %v687_v47 = vadd.f32 %v672_v34, %v659_v39  ;;  %v807_v48 = vadd.f32 %v616_v44, %v236_v63  ;;  %v661_v49 = vadd.f32 %v636_v45, %v434_v13  ;;  %v618_v50 = vpop.f32.mrb[3].mxu0  ;;  %v638_v51 = vpop.f32.mrb[19].mxu1 }
 0x140   :  { %v680_v52 = vadd.f32 %v806_v42, %v676_v37  ;;  %v688_v53 = vadd.f32 %v676_v37, %v660_v43  ;;  %v808_v54 = vadd.f32 %v618_v50, %v238_v1  ;;  %v662_v55 = vadd.f32 %v638_v51, %v436_v17 }
 0x141   :  { %695 = vst [vmem:[#allocation7] sm:$0xff] %v679_v46  ;;  %703 = vst [vmem:[#allocation7 + $0x40] sm:$0xff] %v687_v47  ;;  %v681_v56 = vadd.f32 %v807_v48, %v672_v34  ;;  %v689_v57 = vadd.f32 %v672_v34, %v661_v49 }
 0x142   :  { %696 = vst [vmem:[#allocation7 + $0x8] sm:$0xff] %v680_v52  ;;  %704 = vst [vmem:[#allocation7 + $0x48] sm:$0xff] %v688_v53  ;;  %v682_v58 = vadd.f32 %v808_v54, %v676_v37  ;;  %v690_v59 = vadd.f32 %v676_v37, %v662_v55 }
 0x143   :  { %697 = vst [vmem:[#allocation7 + $0x10] sm:$0xff] %v681_v56  ;;  %705 = vst [vmem:[#allocation7 + $0x50] sm:$0xff] %v689_v57 }
 0x144   :  { %698 = vst [vmem:[#allocation7 + $0x18] sm:$0xff] %v682_v58  ;;  %706 = vst [vmem:[#allocation7 + $0x58] sm:$0xff] %v690_v59  ;;  %v622_v60 = vpop.f32.mrb[4].mxu0  ;;  %v642_v61 = vpop.f32.mrb[20].mxu1 }
 0x145   :  { %v809_v62 = vadd.f32 %v622_v60, %v1069_v2  ;;  %v663_v63 = vadd.f32 %v642_v61, %v440_v21  ;;  %v624_v6 = vpop.f32.mrb[5].mxu0  ;;  %v644_v1 = vpop.f32.mrb[21].mxu1 }
 0x146   :  { %v810_v7 = vadd.f32 %v624_v6, %v1071_v3  ;;  %v664_v8 = vadd.f32 %v644_v1, %v442_v24  ;;  %v626_v0 = vpop.f32.mrb[6].mxu0  ;;  %v646_v9 = vpop.f32.mrb[22].mxu1 }
 0x147   :  { %v683_v10 = vadd.f32 %v809_v62, %v672_v34  ;;  %v691_v11 = vadd.f32 %v672_v34, %v663_v63  ;;  %v811_v12 = vadd.f32 %v626_v0, %v1073_v4  ;;  %v665_v13 = vadd.f32 %v646_v9, %v444_v27  ;;  %v628_v14 = vpop.f32.mrb[7].mxu0  ;;  %v648_v15 = vpop.f32.mrb[23].mxu1 }
 0x148   :  { %v684_v16 = vadd.f32 %v810_v7, %v676_v37  ;;  %v692_v17 = vadd.f32 %v676_v37, %v664_v8  ;;  %v812_v2 = vadd.f32 %v628_v14, %v1075_v5  ;;  %v666_v18 = vadd.f32 %v648_v15, %v446_v31 }
 0x149   :  { %699 = vst [vmem:[#allocation7 + $0x20] sm:$0xff] %v683_v10  ;;  %707 = vst [vmem:[#allocation7 + $0x60] sm:$0xff] %v691_v11  ;;  %v685_v3 = vadd.f32 %v811_v12, %v672_v34  ;;  %v693_v19 = vadd.f32 %v672_v34, %v665_v13 }
 0x14a   :  { %700 = vst [vmem:[#allocation7 + $0x28] sm:$0xff] %v684_v16  ;;  %708 = vst [vmem:[#allocation7 + $0x68] sm:$0xff] %v692_v17  ;;  %v686_v20 = vadd.f32 %v812_v2, %v676_v37  ;;  %v694_v21 = vadd.f32 %v676_v37, %v666_v18 }
 0x14b   :  { %701 = vst [vmem:[#allocation7 + $0x30] sm:$0xff] %v685_v3  ;;  %709 = vst [vmem:[#allocation7 + $0x70] sm:$0xff] %v693_v19 }
 0x14c   :  { %702 = vst [vmem:[#allocation7 + $0x38] sm:$0xff] %v686_v20  ;;  %710 = vst [vmem:[#allocation7 + $0x78] sm:$0xff] %v694_v21 }
 0x14d   :  { %986 = shalt.err (!%p983_p6)
}
 0x14e   :  { %s987_s17 = scalar_lea.hbm %s1099_s3, 2048 }
 0x14f   :  { %p988_p7 = scmp.ne.s32.totalorder %s1099_s3, %s987_s17  ;;  %p991_p8 = scmp.lt.u32.totalorder %s987_s17, %s1099_s3 }
 0x151   :  { %p993_p9 = pnand %p991_p8, %p988_p7 }
 0x153   :  { %996 = shalt.err (!%p993_p9)
}
 0x154   :  { %s1011_s22 = smov 256   ;;  %s1012_s23 = smov 16  }
 0x155   :  { %722 = dma.vmem_to_hbm [thread:$0]  %s717_s13, 2048, %s1099_s3, [#allocation4], %s1011_s22, %s1011_s22, %s1012_s23  }
 0x156   :  { %1001 = dma.done.wait [#allocation4], 2048  }
 0x157   :  { %1002 = vsyncadd [#allocation4], 4294965248 }
 0x158   :  { %726 = vsyncpa [#allocation3], 1 }
 0x159   :  { %727 = vsyncpa [#allocation6], 1 }
 0x15a   :  { %728 = vsyncpa [#allocation4], 1 }

</bundles_post_ra>
